<compile_context>
chip_gen: v7x
topology: tpu7x:2x2x1
jax: 0.10.0
libtpu: 0.0.40
codegen_flags: <defaults>
</compile_context>

<pallas_src>
import jax
import jax.numpy as jnp
from jax.experimental import pallas as pl
from jax.experimental.pallas import tpu as pltpu


def _addmm_kernel(x1_ref, x2_ref, bias_ref, inp_ref, o_ref):
    # MXU matmul + fused VPU elementwise adds; single invocation, no grid.
    v1 = jnp.dot(
        x1_ref[...],
        x2_ref[...],
        precision=jax.lax.Precision.HIGHEST,
        preferred_element_type=jnp.float32,
    )
    o_ref[...] = (v1 + bias_ref[...] + inp_ref[...]).astype(o_ref.dtype)


def addmm_add(x1, x2, bias, inp):
    """Computes (x1 @ x2) + bias + inp in a single un-gridded Pallas TPU kernel.

    x1:   (M, K) float32
    x2:   (K, N) float32
    bias: (1, N) float32   (broadcast over rows)
    inp:  (M, N) float32
    """
    M, K = x1.shape
    K2, N = x2.shape
    assert K == K2
    assert bias.shape == (1, N)
    assert inp.shape == (M, N)

    bytes_accessed = 4 * (M * K + K * N + N + M * N + M * N)
    vmem_full = pl.BlockSpec(memory_space=pltpu.MemorySpace.VMEM)

    # No grid: the whole problem is far below one vreg of data, so the kernel
    # body runs exactly once on full-array VMEM-resident operands.
    return pl.pallas_call(
        _addmm_kernel,
        out_shape=jax.ShapeDtypeStruct((M, N), jnp.float32),
        in_specs=[vmem_full, vmem_full, vmem_full, vmem_full],
        out_specs=vmem_full,
        cost_estimate=pl.CostEstimate(
            flops=2 * M * K * N,
            transcendentals=0,
            bytes_accessed=bytes_accessed,
        ),
    )(x1, x2, bias, inp)


if __name__ == "__main__":
    key = jax.random.PRNGKey(0)
    k1, k2, k3, k4 = jax.random.split(key, 4)

    M, K, N = 6, 12, 6  # shapes implied by the module's fixed test inputs

    x1 = jax.random.normal(k1, (M, K), dtype=jnp.float32)
    x2 = jax.random.normal(k2, (K, N), dtype=jnp.float32)
    inp = jax.random.normal(k3, (M, N), dtype=jnp.float32)
    # Deterministic "parameter" standing in for self.input1 (see TODO above).
    bias = jax.random.uniform(k4, (1, N), dtype=jnp.float32)

    out = addmm_add(x1, x2, bias, inp)
    jax.block_until_ready(out)

    # Correctness check against plain JAX reference.
    ref = jnp.dot(x1, x2, precision=jax.lax.Precision.HIGHEST) + bias + inp
    assert jnp.allclose(out, ref, atol=1e-5, rtol=1e-5), "mismatch vs reference"

    print("KERNEL_OK")
</pallas_src>

<mosaic_0001>
module attributes {stable_mosaic.version = 11 : i64} {
  func.func @_addmm_kernel(%arg0: memref<6x12xf32, #tpu.memory_space<vmem>>, %arg1: memref<12x6xf32, #tpu.memory_space<vmem>>, %arg2: memref<1x6xf32, #tpu.memory_space<vmem>>, %arg3: memref<6x6xf32, #tpu.memory_space<vmem>>, %arg4: memref<6x6xf32, #tpu.memory_space<vmem>>) attributes {dimension_semantics = [], scalar_prefetch = 0 : i64, scratch_operands = 0 : i64, tpu.core_type = #tpu.core_type<tc>} {
    %c0 = arith.constant 0 : index
    %c0_0 = arith.constant 0 : index
    %0 = vector.load %arg0[%c0, %c0_0] : memref<6x12xf32, #tpu.memory_space<vmem>>, vector<6x12xf32>
    %c0_1 = arith.constant 0 : index
    %c0_2 = arith.constant 0 : index
    %1 = vector.load %arg1[%c0_1, %c0_2] : memref<12x6xf32, #tpu.memory_space<vmem>>, vector<12x6xf32>
    %cst = arith.constant dense<0.000000e+00> : vector<6x6xf32>
    %2 = tpu.matmul %0, %1, %cst {dimension_numbers = #tpu.dot_dimension_numbers<[1], [0], [0], [1], [0, 0, 1, 1], [], []>, precision = #tpu.contract_precision<fp32>} : vector<6x12xf32>, vector<12x6xf32>, vector<6x6xf32> -> vector<6x6xf32>
    %c0_3 = arith.constant 0 : index
    %c0_4 = arith.constant 0 : index
    %3 = vector.load %arg2[%c0_3, %c0_4] : memref<1x6xf32, #tpu.memory_space<vmem>>, vector<1x6xf32>
    %4 = vector.broadcast %3 : vector<1x6xf32> to vector<6x6xf32>
    %5 = arith.addf %2, %4 : vector<6x6xf32>
    %c0_5 = arith.constant 0 : index
    %c0_6 = arith.constant 0 : index
    %6 = vector.load %arg3[%c0_5, %c0_6] : memref<6x6xf32, #tpu.memory_space<vmem>>, vector<6x6xf32>
    %7 = arith.addf %5, %6 : vector<6x6xf32>
    %c0_7 = arith.constant 0 : index
    %c0_8 = arith.constant 0 : index
    %8 = vector.load %arg4[%c0_7, %c0_8] : memref<6x6xf32, #tpu.memory_space<vmem>>, vector<6x6xf32>
    tpu.vector_store %arg4[%c0_7, %c0_8], %7 {strides = array<i32>} : memref<6x6xf32, #tpu.memory_space<vmem>>, vector<6x6xf32>,
    return
  }
}

</mosaic_0001>

<bundles_post_ra>
// kernel: tpu_custom_call.1
= control target key start
LH: loop header
LB: loop body
LE: loop exit
PB: predicated region body
PF: predicated region fallthrough
CT: control target
= control target key end

     0   :  { %vm32_vm0 = vcmask 1043456   ;;  %v620_v2 = vmov 0.0|0.0   ;;  %vm28_vm1 = vcmask 97280   ;;  %vm621_vm2 = vmmov 0   ;;  %s682_s0 = inlined_call_operand.vmem [shape: f32[6,12], index: 0, kind: input, shape index: {}]   ;;  %s683_s1 = inlined_call_operand.vmem [shape: f32[12,6], index: 1, kind: input, shape index: {}]   ;;  %s684_s2 = inlined_call_operand.vmem [shape: f32[1,6], index: 2, kind: input, shape index: {}]   ;;  %s685_s3 = inlined_call_operand.vmem [shape: f32[6,6], index: 3, kind: input, shape index: {}]   ;;  %s686_s4 = inlined_call_operand.hbm [shape: f32[6,6], index: 4, kind: output, shape index: {}]  }
   0x1   :  { %v19_v0 = vld [vmem:[%s683_s1] sm:$0xff]  ;;  %v20_v1 = vld [vmem:[%s683_s1 + $0x8] sm:$0xf]  ;;  %574 = vmatprep.subr.bf16.mxu0 %v620_v2  ;;  %577 = vmatprep.subr.bf16.mxu1 %v620_v2  ;;  %v622_v7 = vmov 0.0  }
   0x2   :  { %v34_v3 = vsel %vm32_vm0, %v20_v1, 0  ;;  %v37_v4 = vand.u32 4294901760, %v19_v0  ;;  %v18_v5 = vld [vmem:[%s682_s0] sm:$0x3f]  ;;  %536 = vmatprep.mubr.msk.f32.mxu0 %vm621_vm2, %v622_v7  ;;  %543 = vmatprep.mubr.msk.f32.mxu1 %vm621_vm2, %v622_v7 }
   0x3   :  { %v40_v6 = vand.u32 4294901760, %v34_v3  ;;  %v30_v8 = vsel %vm28_vm1, %v18_v5, 0 }
   0x4   :  { %9 = vsyncpa [#allocation3], 0  ;;  %v115_v9 = vsub.f32 %v19_v0, %v37_v4  ;;  %v103_v10 = vand.u32 4294901760, %v30_v8  ;;  %v513_v26 = vld [vmem:[%s684_s2] ss:$0 sm:$0xff]  ;;  %s623_s2 = smov [#allocation2]  }
   0x5   :  { %v575_v11 = vpack.c.bf16 %v40_v6, %v37_v4  ;;  %v122_v12 = vsub.f32 %v34_v3, %v40_v6  ;;  %v495_v43 = vld [vmem:[%s685_s3] sm:$0x3f]  ;;  %s505_s23 = sshll.u32 %s623_s2, 4  ;;  %vm497_vm3 = vcmask 46080   ;;  %s506_s23 = int_to_ptr.vmem [resolvable:$true] %s505_s23 }
   0x6   :  { %v116_v13 = vand.u32 4294901760, %v115_v9  ;;  %v104_v14 = vsub.f32 %v30_v8, %v103_v10  ;;  %s596_s24 = scalar_lea.vmem %s506_s23, 128  ;;  %p601_p1 = scmp.lt.s32.totalorder %s506_s23, %s506_s23 }
   0x7   :  { %576 = vmatpush3.bf16.msra.mxu0 %v575_v11  ;;  %v123_v15 = vand.u32 4294901760, %v122_v12  ;;  %v581_v22 = vpack.c.bf16 %v122_v12, %v115_v9  ;;  %p597_p0 = scmp.ne.s32.totalorder %s506_s23, %s596_s24  ;;  %p602_p2 = scmp.lt.s32.totalorder %s596_s24, %s596_s24 }
   0x8   :  { %v117_v16 = vsub.f32 %v115_v9, %v116_v13  ;;  %v105_v17 = vand.u32 4294901760, %v104_v14  ;;  %580 = vmatprep.subr.bf16.mxu0 %v620_v2 }
   0x9   :  { %v124_v18 = vsub.f32 %v122_v12, %v123_v15  ;;  %v587_v25 = vpack.c.bf16 %v123_v15, %v116_v13  ;;  %p603_p3 = por %p602_p2, %p601_p1 }
   0xa   :  { %v118_v19 = vand.u32 4294901760, %v117_v16  ;;  %v106_v20 = vsub.f32 %v104_v14, %v105_v17 }
   0xb   :  { %v125_v21 = vand.u32 4294901760, %v124_v18  ;;  %p604_p4 = pnand %p603_p3, %p597_p0 }
   0xc   :  { %v107_v23 = vand.u32 4294901760, %v106_v20 }
   0xd   :  { %v578_v24 = vpack.c.bf16 %v125_v21, %v118_v19 }
   0xe   :  { %537 = vmatmul.mubr.f32.vlgmr.msra.gmra.mrb[0].mxu0 %v107_v23 }
   0xf   :  { %579 = vmatpush3.bf16.msra.mxu1 %v578_v24  ;;  %582 = vmatpush3.bf16.msra.mxu0 %v581_v22 }
  0x10   :  { %583 = vmatprep.subr.bf16.mxu1 %v620_v2  ;;  %550 = vmatprep.mubr.msk.f32.mxu0 %vm621_vm2, %v622_v7 }
  0x11   :  { %586 = vmatprep.subr.bf16.mxu0 %v620_v2 }
  0x12   :  { %544 = vmatmul.mubr.f32.vlgmr.msra.gmra.mrb[0].mxu1 %v103_v10  ;;  %551 = vmatmul.mubr.f32.vlgmr.msra.gmra.mrb[2].mxu0 %v104_v14 }
  0x13   :  { %585 = vmatpush3.bf16.msra.mxu1 %v575_v11  ;;  %557 = vmatprep.mubr.msk.f32.mxu1 %vm621_vm2, %v622_v7 }
  0x14   :  { %588 = vmatpush3.bf16.msra.mxu0 %v587_v25  ;;  %589 = vmatprep.subr.bf16.mxu1 %v620_v2 }
  0x15   :  { %564 = vmatprep.mubr.msk.f32.mxu0 %vm621_vm2, %v622_v7 }
  0x16   :  { %558 = vmatmul.mubr.f32.vlgmr.msra.gmra.mrb[2].mxu1 %v105_v17 }
  0x17   :  { %591 = vmatpush3.bf16.msra.mxu1 %v575_v11  ;;  %565 = vmatmul.mubr.f32.vlgmr.msra.gmra.mrb[4].mxu0 %v103_v10 }
  0x18   :  { %571 = vmatprep.mubr.msk.f32.mxu1 %vm621_vm2, %v622_v7 }
  0x1a   :  { %572 = vmatmul.mubr.f32.vlgmr.msra.gmra.mrb[4].mxu1 %v103_v10 }
  0xe1   :  { %v109_v27 = vpop.f32.mrb[0].mxu0 }
  0xe2   :  { %v110_v28 = vadd.f32 %v513_v26, %v109_v27  ;;  %v538_v29 = vpop.f32.mrb[1].mxu0 }
  0xe5   :  { %v190_v30 = vpop.f32.mrb[0].mxu1  ;;  %v266_v31 = vpop.f32.mrb[2].mxu0 }
  0xe6   :  { %v191_v32 = vadd.f32 %v190_v30, %v110_v28  ;;  %v545_v33 = vpop.f32.mrb[1].mxu1  ;;  %v552_v34 = vpop.f32.mrb[3].mxu0 }
  0xe8   :  { %v267_v35 = vadd.f32 %v266_v31, %v191_v32 }
  0xe9   :  { %v341_v36 = vpop.f32.mrb[2].mxu1 }
  0xea   :  { %v342_v37 = vadd.f32 %v341_v36, %v267_v35  ;;  %v559_v38 = vpop.f32.mrb[3].mxu1  ;;  %v418_v39 = vpop.f32.mrb[4].mxu0 }
  0xeb   :  { %v566_v40 = vpop.f32.mrb[5].mxu0 }
  0xec   :  { %v419_v41 = vadd.f32 %v418_v39, %v342_v37 }
  0xed   :  { %v491_v42 = vpop.f32.mrb[4].mxu1 }
  0xee   :  { %v492_v44 = vadd.f32 %v491_v42, %v419_v41  ;;  %v573_v45 = vpop.f32.mrb[5].mxu1 }
  0xf0   :  { %v496_v46 = vadd.f32 %v495_v43, %v492_v44 }
  0xf2   :  { %498 = vst.msk [vmem:[#allocation2] sm:$0x3f] %vm497_vm3, %v496_v46 }
  0xf3   :  { %607 = shalt.err (!%p604_p4)
}
  0xf4   :  { %s608_s27 = scalar_lea.hbm %s686_s4, 128 }
  0xf5   :  { %p609_p5 = scmp.ne.s32.totalorder %s686_s4, %s608_s27  ;;  %p612_p6 = scmp.lt.u32.totalorder %s608_s27, %s686_s4 }
  0xf7   :  { %p614_p7 = pnand %p612_p6, %p609_p5 }
  0xf9   :  { %617 = shalt.err (!%p614_p7)
}
  0xfa   :  { %508 = dma.vmem_to_hbm [thread:$0]  %s506_s23, 128, %s686_s4, [#allocation3]  }
  0xfb   :  { %618 = dma.done.wait [#allocation3], 128  }
  0xfc   :  { %619 = vsyncadd [#allocation3], 4294967168 }
  0xfd   :  { %512 = vsyncpa [#allocation3], 1 }

</bundles_post_ra>
